<compile_context>
chip_gen: v6e
topology: v6e:2x2x1
jax: 0.10.0
libtpu: 0.0.40
codegen_flags: <defaults>
</compile_context>

<pallas_src>
import jax
import jax.numpy as jnp
from jax import lax
from jax.experimental import pallas as pl
from jax.experimental.pallas import tpu as pltpu

D = 768        # BERT hidden size (implied by nn.Linear(768, 2))
TAU = 1.0      # self.tau = 1


def _round_up(x, m):
    return (x + m - 1) // m * m


def _cdiv(a, b):
    return -(-a // b)


def _select_na_tile(na, na_tile=8192):
    """Lane-dense (x128) NA tile, capped to the bank, >=2 tiles when possible."""
    t = min(_round_up(max(na_tile, 128), 128), _round_up(na, 128))
    if na > 128 and _cdiv(na, t) < 2:
        # Make sure v7x's two TensorCores both get work on the parallel axis.
        t = _round_up(_cdiv(na, 2), 128)
    return t


def _sim_kernel(q_ref, at_ref, scale_ref, out_ref):
    # q_ref:     [NQp, D]        bf16 — full (padded) query batch, resident.
    # at_ref:    [D, NA_TILE]    bf16 — one column tile of the transposed bank.
    # scale_ref: [1, NA_TILE]    f32  — precomputed 1/(||Q||_F * ||a_j|| * tau).
    # out_ref:   [NQp, NA_TILE]  f32
    #
    # MXU: bf16 x bf16 with f32 accumulation; scale broadcasts along lanes.
    s = jnp.dot(q_ref[...], at_ref[...], preferred_element_type=jnp.float32)
    out_ref[...] = s * scale_ref[...]


def prepare_abstract_bank(cls_a, *, na_tile=8192, compute_dtype=jnp.bfloat16):
    """One-time corpus preprocessing (out of the query hot path).

    Returns (at, inv_a, na, tile):
      at    : [D, NA_pad] bf16 transposed bank (canonical MXU RHS layout)
      inv_a : [1, NA_pad] f32 per-abstract inverse L2 norms (0 on padding)
      na    : original number of abstracts
      tile  : NA tile size used for padding (lane-dense)
    """
    na, d = cls_a.shape
    assert d == D
    tile = _select_na_tile(na, na_tile)
    na_pad = _round_up(na, tile)

    a32 = cls_a.astype(jnp.float32)
    inv_a = lax.rsqrt(jnp.maximum(jnp.sum(a32 * a32, axis=1), 1e-30))    # [NA]

    at = jnp.zeros((d, na_pad), compute_dtype).at[:, :na].set(
        cls_a.astype(compute_dtype).T)
    # Padded columns get scale 0 -> sim exactly 0 (sliced off anyway); no
    # reliance on an epsilon floor inside the kernel.
    inv_a_pad = jnp.zeros((1, na_pad), jnp.float32).at[0, :na].set(inv_a)
    return at, inv_a_pad, na, tile


def contrastive_similarity(cls_q, at, inv_a, na, na_tile, *,
                           tau=TAU, compute_dtype=jnp.bfloat16):
    """cls_q: [NQ, D]; (at, inv_a, na, na_tile) from prepare_abstract_bank.

    Returns sim [NQ, NA] f32 = (Q @ A^T) / (||Q||_F * ||A||_row) / tau.
    """
    nq, d = cls_q.shape
    d2, na_pad = at.shape
    assert d == d2 == D
    assert na_pad % na_tile == 0
    num_tiles = na_pad // na_tile

    # Pad NQ to a bf16-friendly sublane multiple (16). Zero rows contribute
    # nothing and padded output rows are sliced off.
    nq_pad = max(16, _round_up(nq, 16))

    # Global Frobenius norm over the whole query batch (torch.norm(CLS_Q) with
    # no dim) — a single scalar, computed once here and folded (with 1/tau)
    # into the streamed per-abstract scale row.
    q32 = cls_q.astype(jnp.float32)
    inv_q = lax.rsqrt(jnp.maximum(jnp.sum(q32 * q32), 1e-30))
    scale = inv_a * (inv_q * jnp.float32(1.0 / tau))            # [1, NA_pad]

    q = jnp.zeros((nq_pad, d), compute_dtype).at[:nq].set(
        cls_q.astype(compute_dtype))

    out = pl.pallas_call(
        _sim_kernel,
        out_shape=jax.ShapeDtypeStruct((nq_pad, na_pad), jnp.float32),
        grid_spec=pltpu.PrefetchScalarGridSpec(
            num_scalar_prefetch=0,
            grid=(num_tiles,),
            in_specs=[
                pl.BlockSpec((nq_pad, d), lambda j: (0, 0)),    # Q resident
                pl.BlockSpec((d, na_tile), lambda j: (0, j)),   # stream A^T
                pl.BlockSpec((1, na_tile), lambda j: (0, j)),   # stream scales
            ],
            out_specs=pl.BlockSpec((nq_pad, na_tile), lambda j: (0, j)),
        ),
        compiler_params=pltpu.CompilerParams(
            dimension_semantics=("parallel",),   # v7x: split NA across 2 TCs
            vmem_limit_bytes=48 << 20,           # 8192-col bf16 tiles fit w/ margin
        ),
    )(q, at, scale)

    return out[:nq, :na]


if __name__ == "__main__":
    key = jax.random.PRNGKey(0)
    kq, ka, kw = jax.random.split(key, 3)

    # Small demo shapes; NA deliberately not a tile multiple so the tile
    # selector produces 2 lane-dense tiles (256 cols each) and exercises the
    # padding + multi-step "parallel" grid path.
    NQ, NA = 8, 500

    # Deterministic stand-ins for BERT pooler_output embeddings.
    cls_q = jax.random.normal(kq, (NQ, D), dtype=jnp.float32)
    cls_a = jax.random.normal(ka, (NA, D), dtype=jnp.float32)

    # nn.Linear(768, 2) is declared in __init__ but unused in forward();
    # initialized deterministically for parity (not applied).
    _linear_w = jax.random.normal(kw, (2, D), dtype=jnp.float32) * 0.02
    _linear_b = jnp.zeros((2,), dtype=jnp.float32)

    # One-time corpus prep (transposed bf16 bank + precomputed inverse norms).
    at, inv_a, na, na_tile = prepare_abstract_bank(cls_a)

    sim = contrastive_similarity(cls_q, at, inv_a, na, na_tile)
    sim = jax.block_until_ready(sim)
    assert sim.shape == (NQ, NA)
    assert bool(jnp.all(jnp.isfinite(sim)))

    # Tight check vs. a reference that mirrors the kernel's arithmetic:
    # bf16-rounded embeddings in the matmul, f32 norms in the scale.
    qb = cls_q.astype(jnp.bfloat16).astype(jnp.float32)
    ab = cls_a.astype(jnp.bfloat16).astype(jnp.float32)
    ref_b = (qb @ ab.T) / (jnp.linalg.norm(cls_q) * jnp.linalg.norm(cls_a, axis=1))
    ref_b = ref_b / TAU
    assert jnp.allclose(sim, ref_b, rtol=1e-3, atol=2e-5)

    # Loose check vs. the exact f32 PyTorch semantics (bf16 input rounding only).
    ref_f = (cls_q @ cls_a.T) / (
        jnp.linalg.norm(cls_q) * jnp.linalg.norm(cls_a, axis=1))
    ref_f = ref_f / TAU
    assert jnp.allclose(sim, ref_f, rtol=2e-2, atol=2e-3)

    print("KERNEL_OK")
</pallas_src>

<mosaic_0001>
module attributes {stable_mosaic.version = 11 : i64} {
  func.func @_sim_kernel(%arg0: i32, %arg1: memref<16x768xbf16, #tpu.memory_space<vmem>>, %arg2: memref<768x256xbf16, #tpu.memory_space<vmem>>, %arg3: memref<1x256xf32, #tpu.memory_space<vmem>>, %arg4: memref<16x256xf32, #tpu.memory_space<vmem>>) attributes {dimension_semantics = [#tpu.dimension_semantics<parallel>], iteration_bounds = array<i64: 2>, scalar_prefetch = 0 : i64, scratch_operands = 0 : i64, tpu.core_type = #tpu.core_type<tc>, window_params = [{pipeline_mode = #tpu.pipeline_mode<synchronous>, transform_indices = @transform_0, window_bounds = array<i64: 16, 768>}, {transform_indices = @transform_1, window_bounds = array<i64: 768, 256>}, {transform_indices = @transform_2, window_bounds = array<i64: 1, 256>}, {transform_indices = @transform_3, window_bounds = array<i64: 16, 256>}]} {
    %c0 = arith.constant 0 : index
    %c0_0 = arith.constant 0 : index
    %0 = vector.load %arg1[%c0, %c0_0] : memref<16x768xbf16, #tpu.memory_space<vmem>>, vector<16x768xbf16>
    %c0_1 = arith.constant 0 : index
    %c0_2 = arith.constant 0 : index
    %1 = vector.load %arg2[%c0_1, %c0_2] : memref<768x256xbf16, #tpu.memory_space<vmem>>, vector<768x256xbf16>
    %cst = arith.constant dense<0.000000e+00> : vector<16x256xf32>
    %2 = tpu.matmul %0, %1, %cst {dimension_numbers = #tpu.dot_dimension_numbers<[1], [0], [0], [1], [0, 0, 1, 1], [], []>} : vector<16x768xbf16>, vector<768x256xbf16>, vector<16x256xf32> -> vector<16x256xf32>
    %c0_3 = arith.constant 0 : index
    %c0_4 = arith.constant 0 : index
    %3 = vector.load %arg3[%c0_3, %c0_4] : memref<1x256xf32, #tpu.memory_space<vmem>>, vector<1x256xf32>
    %4 = vector.broadcast %3 : vector<1x256xf32> to vector<16x256xf32>
    %5 = arith.mulf %2, %4 : vector<16x256xf32>
    %c0_5 = arith.constant 0 : index
    %c0_6 = arith.constant 0 : index
    %6 = vector.load %arg4[%c0_5, %c0_6] : memref<16x256xf32, #tpu.memory_space<vmem>>, vector<16x256xf32>
    tpu.vector_store %arg4[%c0_5, %c0_6], %5 {strides = array<i32>} : memref<16x256xf32, #tpu.memory_space<vmem>>, vector<16x256xf32>,
    return
  }
  func.func @transform_0(%arg0: i32) -> (i32, i32) {
    %c0_i32 = arith.constant 0 : i32
    %c0_i32_0 = arith.constant 0 : i32
    %c0_i32_1 = arith.constant 0 : i32
    return %c0_i32, %c0_i32_0 : i32, i32
  }
  func.func @transform_1(%arg0: i32) -> (i32, i32) {
    %c0_i32 = arith.constant 0 : i32
    %c0_i32_0 = arith.constant 0 : i32
    return %c0_i32, %arg0 : i32, i32
  }
  func.func @transform_2(%arg0: i32) -> (i32, i32) {
    %c0_i32 = arith.constant 0 : i32
    %c0_i32_0 = arith.constant 0 : i32
    return %c0_i32, %arg0 : i32, i32
  }
  func.func @transform_3(%arg0: i32) -> (i32, i32) {
    %c0_i32 = arith.constant 0 : i32
    %c0_i32_0 = arith.constant 0 : i32
    return %c0_i32, %arg0 : i32, i32
  }
}

</mosaic_0001>

<bundles_post_ra>
// kernel: tpu_custom_call.1
= control target key start
LH: loop header
LB: loop body
LE: loop exit
PB: predicated region body
PF: predicated region fallthrough
CT: control target
= control target key end

     0   :  { %8 = vsyncpa [#allocation3], 0  ;;  %s1977_s0 = inlined_call_operand.hbm [shape: bf16[16,768], index: 0, kind: input, shape index: {}]   ;;  %s1978_s1 = inlined_call_operand.hbm [shape: bf16[768,512], index: 1, kind: input, shape index: {}]   ;;  %s1979_s2 = inlined_call_operand.hbm [shape: f32[1,512], index: 2, kind: input, shape index: {}]   ;;  %s1980_s3 = inlined_call_operand.hbm [shape: f32[16,512], index: 3, kind: output, shape index: {}]  }
   0x1   :  { %9 = vsyncpa [#allocation6], 0 }
   0x2   :  { %11 = vsyncpa [#allocation6 + $0x1], 0 }
   0x3   :  { %12 = vsyncpa [#allocation4], 0 }
   0x4   :  { %14 = vsyncpa [#allocation4 + $0x1], 0  ;;  %s1654_s12 = smov 0   ;;  %s1656_s13 = smov 0  }
   0x5   :  { %s1658_s14 = smov 0   ;;  %s1660_s15 = smov 0  }
   0x6 LB: > { %s1675_s16 = sadd.s32 1, %s1620_s15   ;;  %s48_s17 = sadd.s32 1, %s1616_s14  ;;  %s1620_s15 = sphi %s1660_s15, %s2002_s15   ;;  %s1616_s14 = sphi %s1658_s14, %s2001_s14   ;;  %s1612_s13 = sphi %s1656_s13, %s2000_s13   ;;  %s1608_s12 = sphi %s1654_s12, %s1999_s12  }
   0x7   : > { %s45_s18 = ssub.s32 %s1620_s15, %s1675_s16  ;;  %p55_p0 = scmp.ne.s32.totalorder %s1616_s14, %s1612_s13 }
   0x8   : > { %p46_p1 = scmp.eq.s32.totalorder %s45_s18, 0  ;;  %p56_p2 = scmp.eq.s32.totalorder %s1620_s15, 0 }
   0x9   : > { %p1273_p4 = scmp.lt.s32.totalorder %s1620_s15, 2  ;;  %s150_s20 = sand.u32 1, %s1620_s15  }
   0xa   : > { %s1686_s19 = scalar_select %p46_p1, %s1616_s14, %s48_s17  }
   0xb   : > { %p57_p5 = por %p56_p2, %p55_p0  ;;  %s152_s21 = sand.u32 1, %s1616_s14  }
   0xc   : > { %s1245_s22 = smul.u32 768, %s152_s21  ;;  %s1242_s23 = sshll.u32 %s1620_s15, 7 }
   0xd   : > { %s1699_s26 = scalar_lea.hbm %s1978_s1, %s1242_s23  ;;  %p1701_p6 = pnand %p1273_p4, %p57_p5 }
   0xe   : > { %s154_s28 = scalar_lea.vmem [#allocation5], %s1245_s22  ;;  %s1707_s30 = scalar_lea.sflag [#allocation6], %s150_s20 }
   0xf   : > { %s161_s29 = sshll.u32 %s154_s28, 4  ;;  %s1470_s4 = scalar_lea.hbm %s1699_s26, 12288  ;;  %s1705_s29 = int_to_ptr.vmem [resolvable:$true] %s161_s29 }
  0x10   : > { %p1471_p7 = scmp.ne.s32.totalorder %s1699_s26, %s1470_s4  ;;  %p1982_p8 = pneg %p1701_p6 }
  0x11   : > { %s1475_s7 = scalar_lea.hbm %s1978_s1, 24576  ;;  %p1476_p11 = scmp.lt.s32.totalorder %s1699_s26, %s1978_s1 }
  0x12   : > { %p1473_p9 = pnand %p1982_p8, %p1471_p7  ;;  %p1477_p12 = scmp.lt.s32.totalorder %s1475_s7, %s1470_s4 }
  0x14   : > { %p1474_p10 = pneg %p1473_p9  ;;  %p1478_p13 = por %p1477_p12, %p1476_p11 }
  0x16   : > { %p1479_p1 = pnand %p1478_p13, %p1474_p10 }
  0x18   : > { %1482 = shalt.err (!%p1479_p1)
}
  0x19   : > { %s1483_s10 = scalar_lea.vmem %s1705_s29, 12288  ;;  %s1622_s11 = smov [#allocation5]  }
  0x1a   : > { %p1484_p2 = scmp.ne.s32.totalorder %s1705_s29, %s1483_s10  ;;  %s1488_s17 = sshll.u32 %s1622_s11, 4  ;;  %s1489_s17 = int_to_ptr.vmem [resolvable:$false] %s1488_s17 }
  0x1b   : > { %s1490_s18 = scalar_lea.vmem %s1489_s17, 24576  ;;  %p1491_p7 = scmp.lt.s32.totalorder %s1705_s29, %s1489_s17 }
  0x1c   : > { %p1486_p4 = pnand %p1484_p2, %p1982_p8  ;;  %p1492_p9 = scmp.lt.s32.totalorder %s1490_s18, %s1483_s10 }
  0x1e   : > { %p1487_p5 = pneg %p1486_p4  ;;  %p1493_p3 = por %p1492_p9, %p1491_p7 }
  0x20   : > { %p1494_p11 = pnand %p1493_p3, %p1487_p5 }
  0x22   : > { %1497 = shalt.err (!%p1494_p11)
}
  0x23   : > { %s1623_s20 = smov 256   ;;  %s1624_s22 = smov 128  }
  0x24   : > { %s1625_s23 = smov 8   ;;  %s1735_s24 = sadd.s32 4294967295, %s1620_s15  }
  0x25   : > { %1264 = dma.hbm_to_vmem [thread:$0]  (!%p1701_p6), %s1699_s26, 12288, %s1705_s29, %s1707_s30, %s1623_s20, %s1624_s22, %s1625_s23  }
  0x26   : > { %s1122_s25 = sadd.s32 4294967294, %s1620_s15   ;;  %p61_p3 = scmp.ne.s32.totalorder %s1612_s13, %s1608_s12 }
  0x27   : > { %p1981_p10 = scmp.eq.s32.totalorder %s1735_s24, 0  ;;  %p111_p12 = scmp.eq.s32.totalorder %s1735_s24, 1 }
  0x28   : > { %p117_p13 = scmp.eq.s32.totalorder %s1122_s25, 1  ;;  %p1123_p1 = scmp.ge.s32.totalorder %s1620_s15, 1 }
  0x29   : > { %p1745_p2 = por %p1981_p10, %p61_p3  ;;  %p1752_p4 = por %p111_p12, %p55_p0 }
  0x2a   : > { %p1756_p5 = por %p117_p13, %p61_p3  ;;  %p124_p7 = scmp.lt.s32.totalorder %s1620_s15, 3 }
  0x2b   : > { %s1986_s28 = scalar_select %p1745_p2, 1, 0 }
  0x2c   : > { %s1987_s26 = scalar_select %p1752_p4, 1, 0 }
  0x2d   : > { %s1988_s29 = scalar_select %p1756_p5, 1, 0 }
  0x2e   : > { %p1761_p9 = pnand %p1123_p1, %p124_p7  ;;  %s1626_s5 = smov [#allocation2]  }
  0x2f   : > { %s136_s6 = sshll.u32 %s1626_s5, 4  ;;  %s1128_s7 = sshll.u32 %s152_s21, 1  ;;  %s137_s6 = int_to_ptr.vmem [resolvable:$true] %s136_s6 }
  0x30   : > { %p1257_p11 = pneg %p1761_p9  ;;  %s1243_s8 = sshll.u32 %s1620_s15, 5 }
  0x31   : > { %s1779_s17 = scalar_lea.hbm %s1979_s2, %s1243_s8  ;;  %s175_s18 = scalar_lea.vmem [#allocation7], %s1128_s7 }
  0x32   : > { %p1772_p0 = pnand %p1257_p11, %p1981_p10  ;;  %s183_s20 = sshll.u32 %s175_s18, 4  ;;  %s1781_s20 = int_to_ptr.vmem [resolvable:$true] %s183_s20 }
  0x33   : > { %s1509_s22 = scalar_lea.vmem %s137_s6, 768  ;;  %p1517_p7 = scmp.lt.s32.totalorder %s137_s6, %s137_s6 }
  0x34   : > { %p1500_p3 = pneg %p1772_p0  ;;  %p1510_p12 = scmp.ne.s32.totalorder %s137_s6, %s1509_s22 }
  0x35   : > { %p1518_p11 = scmp.lt.s32.totalorder %s1509_s22, %s1509_s22 }
  0x36   : > { %p1512_p13 = pnand %p1510_p12, %p1500_p3 }
  0x37   : > { %p1519_p10 = por %p1518_p11, %p1517_p7 }
  0x38   : > { %p1513_p1 = pneg %p1512_p13 }
  0x3a   : > { %p1520_p8 = pnand %p1519_p10, %p1513_p1 }
  0x3c   : > { %1523 = shalt.err (!%p1520_p8)
}
  0x3d   : > { %s1627_s21 = smov 384   ;;  %s1628_s23 = smov 24  }
  0x3e   : > { %1260 = dma.hbm_to_vmem [thread:$0]  (!%p1772_p0), %s1977_s0, 768, %s137_s6, [#allocation3], %s1627_s21, %s1627_s21, %s1628_s23  }
  0x3f   : > { %s1524_s7 = scalar_lea.hbm %s1779_s17, 32  ;;  %p1991_p12 = pneg %p1701_p6 }
  0x40   : > { %p1525_p3 = scmp.ne.s32.totalorder %s1779_s17, %s1524_s7  ;;  %s1529_s11 = scalar_lea.hbm %s1979_s2, 64 }
  0x41   : > { %p1530_p8 = scmp.lt.s32.totalorder %s1779_s17, %s1979_s2  ;;  %p1531_p10 = scmp.lt.s32.totalorder %s1529_s11, %s1524_s7 }
  0x42   : > { %p1527_p13 = pnand %p1525_p3, %p1991_p12 }
  0x43   : > { %p1532_p1 = por %p1531_p10, %p1530_p8 }
  0x44   : > { %p1528_p7 = pneg %p1527_p13 }
  0x46   : > { %p1533_p11 = pnand %p1532_p1, %p1528_p7 }
  0x48   : > { %1536 = shalt.err (!%p1533_p11)
}
  0x49   : > { %s1537_s6 = scalar_lea.vmem %s1781_s20, 32  ;;  %p1992_p3 = pmov %p1991_p12 }
  0x4a   : > { %p1538_p0 = scmp.ne.s32.totalorder %s1781_s20, %s1537_s6  ;;  %s1629_s9 = smov [#allocation7]  }
  0x4b   : > { %s1542_s21 = sshll.u32 %s1629_s9, 4  ;;  %s1543_s21 = int_to_ptr.vmem [resolvable:$false] %s1542_s21 }
  0x4c   : > { %p1540_p12 = pnand %p1538_p0, %p1992_p3  ;;  %s1544_s23 = scalar_lea.vmem %s1543_s21, 64 }
  0x4d   : > { %p1545_p5 = scmp.lt.s32.totalorder %s1781_s20, %s1543_s21  ;;  %p1546_p4 = scmp.lt.s32.totalorder %s1544_s23, %s1537_s6 }
  0x4e   : > { %p1541_p13 = pneg %p1540_p12 }
  0x4f   : > { %p1547_p2 = por %p1546_p4, %p1545_p5 }
  0x51   : > { %p1548_p8 = pnand %p1547_p2, %p1541_p13 }
  0x53   : > { %1551 = shalt.err (!%p1548_p8)
}
  0x54   : > { %1267 = dma.hbm_to_vmem [thread:$0]  (!%p1701_p6), %s1779_s17, 32, %s1781_s20, %s1707_s30  }
  0x55   : > { %192 = sbr.rel (%p1761_p9) target bundleno = 443 (0x1bb), region = 32  ;;  %p1993_p7 = scmp.eq.s32.totalorder (!%p1761_p9), %s1735_s24, 0 }
  0x5a   : > { %1595 = dma.done.wait (%p1993_p7), [#allocation3], 768   ;;  %p1994_p10 = pmov %p1993_p7 }
  0x5b   : > { %s198_s25 = sand.u32 1, %s1735_s24   ;;  %s1821_s5 = sand.u32 1, %s1612_s13  }
  0x5c   : > { %1597 = vsyncadd (%p1994_p10), [#allocation3], 4294966528  ;;  %s1246_s27 = smul.u32 768, %s1821_s5  ;;  %s199_s7 = scalar_lea.sflag [#allocation6], %s198_s25 }
  0x5d   : > { %p1995_p6 = scmp.ne.s32.totalorder %s1986_s28, 0 }
  0x5e   : > { %s1824_s8 = scalar_lea.vmem [#allocation5], %s1246_s27 }
  0x5f   : > { %1599 = dma.done.wait (%p1995_p6), %s199_s7, 12320  }
  0x60   : > { %1601 = vsyncadd (%p1995_p6), %s199_s7, 4294954976  ;;  %v1317_v0 = vld [vmem:[%s1824_s8 + $0x74] ss:$8 sps:$4 sm:$0xff]   ;;  %v1321_v2 = vld [vmem:[%s1824_s8 + $0x70] ss:$8 sps:$4 sm:$0xff]   ;;  %s1133_s30 = sshll.u32 %s1821_s5, 1 }
  0x61   : > { %v1319_v1 = vld [vmem:[%s1824_s8 + $0x174] ss:$8 sps:$4 sm:$0xff]   ;;  %854 = vmatprep.subr.bf16.mxu0 %v1317_v0  ;;  %v1322_v3 = vld [vmem:[%s1824_s8 + $0x170] ss:$8 sps:$4 sm:$0xff]   ;;  %v1323_v4 = vld [vmem:[%s1824_s8 + $0x64] ss:$8 sps:$4 sm:$0xff]  }
  0x62   : > { %897 = vmatprep.subr.bf16.mxu1 %v1319_v1  ;;  %855 = vmatpush1.bf16.msra.mxu0 %v1321_v2  ;;  %v1325_v5 = vld [vmem:[%s1824_s8 + $0x164] ss:$8 sps:$4 sm:$0xff]   ;;  %v1327_v6 = vld [vmem:[%s1824_s8 + $0x60] ss:$8 sps:$4 sm:$0xff]   ;;  %v1329_v8 = vld [vmem:[%s1824_s8 + $0x54] ss:$8 sps:$4 sm:$0xff]  }
  0x63   : > { %898 = vmatpush1.bf16.msra.mxu1 %v1322_v3  ;;  %856 = vmatprep.subr.bf16.mxu0 %v1323_v4  ;;  %v1328_v7 = vld [vmem:[%s1824_s8 + $0x160] ss:$8 sps:$4 sm:$0xff]   ;;  %v1331_v9 = vld [vmem:[%s1824_s8 + $0x154] ss:$8 sps:$4 sm:$0xff]   ;;  %v1333_v10 = vld [vmem:[%s1824_s8 + $0x50] ss:$8 sps:$4 sm:$0xff]  }
  0x64   : > { %899 = vmatprep.subr.bf16.mxu1 %v1325_v5  ;;  %v1334_v11 = vld [vmem:[%s1824_s8 + $0x150] ss:$8 sps:$4 sm:$0xff]   ;;  %v1335_v12 = vld [vmem:[%s1824_s8 + $0x44] ss:$8 sps:$4 sm:$0xff]   ;;  %v1339_v14 = vld [vmem:[%s1824_s8 + $0x40] ss:$8 sps:$4 sm:$0xff]  }
  0x65   : > { %v1337_v13 = vld [vmem:[%s1824_s8 + $0x144] ss:$8 sps:$4 sm:$0xff]   ;;  %v1340_v15 = vld [vmem:[%s1824_s8 + $0x140] ss:$8 sps:$4 sm:$0xff]   ;;  %v1341_v16 = vld [vmem:[%s1824_s8 + $0x34] ss:$8 sps:$4 sm:$0xff]  }
  0x66   : > { %857 = vmatpush1.bf16.msra.mxu0 %v1327_v6  ;;  %v1343_v17 = vld [vmem:[%s1824_s8 + $0x134] ss:$8 sps:$4 sm:$0xff]   ;;  %v1345_v18 = vld [vmem:[%s1824_s8 + $0x30] ss:$8 sps:$4 sm:$0xff]   ;;  %v1347_v20 = vld [vmem:[%s1824_s8 + $0x24] ss:$8 sps:$4 sm:$0xff]  }
  0x67   : > { %900 = vmatpush1.bf16.msra.mxu1 %v1328_v7  ;;  %858 = vmatprep.subr.bf16.mxu0 %v1329_v8  ;;  %v1346_v19 = vld [vmem:[%s1824_s8 + $0x130] ss:$8 sps:$4 sm:$0xff]   ;;  %v1349_v21 = vld [vmem:[%s1824_s8 + $0x124] ss:$8 sps:$4 sm:$0xff]   ;;  %v1351_v22 = vld [vmem:[%s1824_s8 + $0x20] ss:$8 sps:$4 sm:$0xff]  }
  0x68   : > { %901 = vmatprep.subr.bf16.mxu1 %v1331_v9  ;;  %v1352_v23 = vld [vmem:[%s1824_s8 + $0x120] ss:$8 sps:$4 sm:$0xff]   ;;  %v1353_v24 = vld [vmem:[%s1824_s8 + $0x14] ss:$8 sps:$4 sm:$0xff]   ;;  %v1357_v26 = vld [vmem:[%s1824_s8 + $0x10] ss:$8 sps:$4 sm:$0xff]  }
  0x69   : > { %v1355_v25 = vld [vmem:[%s1824_s8 + $0x114] ss:$8 sps:$4 sm:$0xff]   ;;  %v1358_v27 = vld [vmem:[%s1824_s8 + $0x110] ss:$8 sps:$4 sm:$0xff]   ;;  %v1359_v28 = vld [vmem:[%s1824_s8 + $0x4] ss:$8 sps:$4 sm:$0xff]  }
  0x6a   : > { %859 = vmatpush1.bf16.msra.mxu0 %v1333_v10  ;;  %v1361_v29 = vld [vmem:[%s1824_s8 + $0x104] ss:$8 sps:$4 sm:$0xff]   ;;  %v1363_v30 = vld [vmem:[%s1824_s8] ss:$8 sps:$4 sm:$0xff]   ;;  %v1365_v32 = vld [vmem:[%s1824_s8 + $0xf4] ss:$8 sps:$4 sm:$0xff]  }
  0x6b   : > { %902 = vmatpush1.bf16.msra.mxu1 %v1334_v11  ;;  %860 = vmatprep.subr.bf16.mxu0 %v1335_v12  ;;  %v1364_v31 = vld [vmem:[%s1824_s8 + $0x100] ss:$8 sps:$4 sm:$0xff]   ;;  %v1367_v33 = vld [vmem:[%s1824_s8 + $0x1f4] ss:$8 sps:$4 sm:$0xff]   ;;  %v1369_v34 = vld [vmem:[%s1824_s8 + $0xf0] ss:$8 sps:$4 sm:$0xff]  }
  0x6c   : > { %903 = vmatprep.subr.bf16.mxu1 %v1337_v13  ;;  %v1370_v35 = vld [vmem:[%s1824_s8 + $0x1f0] ss:$8 sps:$4 sm:$0xff]   ;;  %v1371_v36 = vld [vmem:[%s1824_s8 + $0xe4] ss:$8 sps:$4 sm:$0xff]   ;;  %v1375_v38 = vld [vmem:[%s1824_s8 + $0xe0] ss:$8 sps:$4 sm:$0xff]  }
  0x6d   : > { %v1373_v37 = vld [vmem:[%s1824_s8 + $0x1e4] ss:$8 sps:$4 sm:$0xff]   ;;  %v1376_v39 = vld [vmem:[%s1824_s8 + $0x1e0] ss:$8 sps:$4 sm:$0xff]   ;;  %v1377_v40 = vld [vmem:[%s1824_s8 + $0xd4] ss:$8 sps:$4 sm:$0xff]  }
  0x6e   : > { %861 = vmatpush1.bf16.msra.mxu0 %v1339_v14  ;;  %v1379_v41 = vld [vmem:[%s1824_s8 + $0x1d4] ss:$8 sps:$4 sm:$0xff]   ;;  %v1381_v42 = vld [vmem:[%s1824_s8 + $0xd0] ss:$8 sps:$4 sm:$0xff]   ;;  %v1383_v44 = vld [vmem:[%s1824_s8 + $0xc4] ss:$8 sps:$4 sm:$0xff]  }
  0x6f   : > { %904 = vmatpush1.bf16.msra.mxu1 %v1340_v15  ;;  %862 = vmatprep.subr.bf16.mxu0 %v1341_v16  ;;  %v1382_v43 = vld [vmem:[%s1824_s8 + $0x1d0] ss:$8 sps:$4 sm:$0xff]   ;;  %v1385_v45 = vld [vmem:[%s1824_s8 + $0x1c4] ss:$8 sps:$4 sm:$0xff]   ;;  %v1387_v46 = vld [vmem:[%s1824_s8 + $0xc0] ss:$8 sps:$4 sm:$0xff]  }
  0x70   : > { %905 = vmatprep.subr.bf16.mxu1 %v1343_v17  ;;  %v1388_v47 = vld [vmem:[%s1824_s8 + $0x1c0] ss:$8 sps:$4 sm:$0xff]   ;;  %v1389_v48 = vld [vmem:[%s1824_s8 + $0xb4] ss:$8 sps:$4 sm:$0xff]   ;;  %v1393_v52 = vld [vmem:[%s1824_s8 + $0xb0] ss:$8 sps:$4 sm:$0xff]  }
  0x71   : > { %v1415_v49 = vld [vmem:[#allocation2 + $0x4] ss:$24 sps:$4 sm:$0xff]   ;;  %v1394_v53 = vld [vmem:[%s1824_s8 + $0x1b0] ss:$8 sps:$4 sm:$0xff]   ;;  %v1399_v56 = vld [vmem:[%s1824_s8 + $0xa0] ss:$8 sps:$4 sm:$0xff]  }
  0x72   : > { %863 = vmatpush1.bf16.msra.mxu0 %v1345_v18  ;;  %v1391_v50 = vld [vmem:[%s1824_s8 + $0x1b4] ss:$8 sps:$4 sm:$0xff]   ;;  %886 = vmatprep.mubr.bf16.mxu0 %v1415_v49  ;;  %v1395_v54 = vld [vmem:[%s1824_s8 + $0xa4] ss:$8 sps:$4 sm:$0xff]   ;;  %v1400_v57 = vld [vmem:[%s1824_s8 + $0x1a0] ss:$8 sps:$4 sm:$0xff]  }
  0x73   : > { %906 = vmatpush1.bf16.msra.mxu1 %v1346_v19  ;;  %864 = vmatprep.subr.bf16.mxu0 %v1347_v20  ;;  %v1418_v51 = vld [vmem:[#allocation2 + $0xc] ss:$24 sps:$4 sm:$0xff]   ;;  %v1397_v55 = vld [vmem:[%s1824_s8 + $0x1a4] ss:$8 sps:$4 sm:$0xff]   ;;  %v1405_v60 = vld [vmem:[%s1824_s8 + $0x90] ss:$8 sps:$4 sm:$0xff]  }
  0x74   : > { %907 = vmatprep.subr.bf16.mxu1 %v1349_v21  ;;  %929 = vmatprep.mubr.bf16.mxu1 %v1418_v51  ;;  %v1401_v58 = vld [vmem:[%s1824_s8 + $0x94] ss:$8 sps:$4 sm:$0xff]   ;;  %v1406_v61 = vld [vmem:[%s1824_s8 + $0x190] ss:$8 sps:$4 sm:$0xff]   ;;  %v1407_v62 = vld [vmem:[%s1824_s8 + $0x84] ss:$8 sps:$4 sm:$0xff]  }
  0x75   : > { %v1403_v59 = vld [vmem:[%s1824_s8 + $0x194] ss:$8 sps:$4 sm:$0xff]   ;;  %v1409_v63 = vld [vmem:[%s1824_s8 + $0x184] ss:$8 sps:$4 sm:$0xff]   ;;  %v1411_v0 = vld [vmem:[%s1824_s8 + $0x80] ss:$8 sps:$4 sm:$0xff]  }
  0x76   : > { %865 = vmatpush1.bf16.msra.mxu0 %v1351_v22  ;;  %v1412_v1 = vld [vmem:[%s1824_s8 + $0x180] ss:$8 sps:$4 sm:$0xff]   ;;  %v1421_v2 = vld [vmem:[%s1824_s8 + $0x274] ss:$8 sps:$4 sm:$0xff]   ;;  %v1416_v4 = vld [vmem:[#allocation2 + $0x8] ss:$24 sps:$4 sm:$0xff]  }
  0x77   : > { %908 = vmatpush1.bf16.msra.mxu1 %v1352_v23  ;;  %866 = vmatprep.subr.bf16.mxu0 %v1353_v24  ;;  %v1413_v3 = vld [vmem:[#allocation2] ss:$24 sps:$4 sm:$0xff]   ;;  %v1424_v6 = vld [vmem:[%s1824_s8 + $0x264] ss:$8 sps:$4 sm:$0xff]   ;;  %v1427_v9 = vld [vmem:[%s1824_s8 + $0x254] ss:$8 sps:$4 sm:$0xff]  }
  0x78   : > { %909 = vmatprep.subr.bf16.mxu1 %v1355_v25  ;;  %v1419_v5 = vld [vmem:[%s1824_s8 + $0x270] ss:$8 sps:$4 sm:$0xff]   ;;  %v1469_v7 = vld [vmem:[#allocation2 + $0x14] ss:$24 sps:$4 sm:$0xff]   ;;  %v1422_v8 = vld [vmem:[%s1824_s8 + $0x260] ss:$8 sps:$4 sm:$0xff]  }
  0x79   : > { %v1425_v10 = vld [vmem:[%s1824_s8 + $0x250] ss:$8 sps:$4 sm:$0xff]   ;;  %v1430_v11 = vld [vmem:[%s1824_s8 + $0x244] ss:$8 sps:$4 sm:$0xff]   ;;  %v1428_v12 = vld [vmem:[%s1824_s8 + $0x240] ss:$8 sps:$4 sm:$0xff]  }
  0x7a   : > { %867 = vmatpush1.bf16.msra.mxu0 %v1357_v26  ;;  %v1433_v13 = vld [vmem:[%s1824_s8 + $0x234] ss:$8 sps:$4 sm:$0xff]   ;;  %v1431_v14 = vld [vmem:[%s1824_s8 + $0x230] ss:$8 sps:$4 sm:$0xff]   ;;  %v1436_v15 = vld [vmem:[%s1824_s8 + $0x224] ss:$8 sps:$4 sm:$0xff]  }
  0x7b   : > { %910 = vmatpush1.bf16.msra.mxu1 %v1358_v27  ;;  %868 = vmatprep.subr.bf16.mxu0 %v1359_v28  ;;  %v1434_v16 = vld [vmem:[%s1824_s8 + $0x220] ss:$8 sps:$4 sm:$0xff]   ;;  %v1439_v17 = vld [vmem:[%s1824_s8 + $0x214] ss:$8 sps:$4 sm:$0xff]   ;;  %v1437_v18 = vld [vmem:[%s1824_s8 + $0x210] ss:$8 sps:$4 sm:$0xff]  }
  0x7c   : > { %911 = vmatprep.subr.bf16.mxu1 %v1361_v29  ;;  %v1442_v19 = vld [vmem:[%s1824_s8 + $0x204] ss:$8 sps:$4 sm:$0xff]   ;;  %v1440_v20 = vld [vmem:[%s1824_s8 + $0x200] ss:$8 sps:$4 sm:$0xff]   ;;  %v1445_v21 = vld [vmem:[%s1824_s8 + $0x2f4] ss:$8 sps:$4 sm:$0xff]  }
  0x7d   : > { %v1443_v22 = vld [vmem:[%s1824_s8 + $0x2f0] ss:$8 sps:$4 sm:$0xff]   ;;  %v1448_v23 = vld [vmem:[%s1824_s8 + $0x2e4] ss:$8 sps:$4 sm:$0xff]   ;;  %v1446_v24 = vld [vmem:[%s1824_s8 + $0x2e0] ss:$8 sps:$4 sm:$0xff]  }
  0x7e   : > { %869 = vmatpush1.bf16.msra.mxu0 %v1363_v30  ;;  %v1451_v25 = vld [vmem:[%s1824_s8 + $0x2d4] ss:$8 sps:$4 sm:$0xff]   ;;  %v1449_v26 = vld [vmem:[%s1824_s8 + $0x2d0] ss:$8 sps:$4 sm:$0xff]   ;;  %v1454_v27 = vld [vmem:[%s1824_s8 + $0x2c4] ss:$8 sps:$4 sm:$0xff]  }
  0x7f   : > { %912 = vmatpush1.bf16.msra.mxu1 %v1364_v31  ;;  %870 = vmatprep.subr.bf16.mxu0 %v1365_v32  ;;  %v1452_v28 = vld [vmem:[%s1824_s8 + $0x2c0] ss:$8 sps:$4 sm:$0xff]   ;;  %v1457_v29 = vld [vmem:[%s1824_s8 + $0x2b4] ss:$8 sps:$4 sm:$0xff]   ;;  %v1455_v30 = vld [vmem:[%s1824_s8 + $0x2b0] ss:$8 sps:$4 sm:$0xff]  }
  0x80   : > { %913 = vmatprep.subr.bf16.mxu1 %v1367_v33  ;;  %v1460_v31 = vld [vmem:[%s1824_s8 + $0x2a4] ss:$8 sps:$4 sm:$0xff]   ;;  %v1458_v32 = vld [vmem:[%s1824_s8 + $0x2a0] ss:$8 sps:$4 sm:$0xff]   ;;  %v1463_v33 = vld [vmem:[%s1824_s8 + $0x294] ss:$8 sps:$4 sm:$0xff]  }
  0x81   : > { %s211_s28 = scalar_lea.vmem [#allocation7], %s1133_s30  ;;  %s1134_s4 = sshll.u32 %s1821_s5, 5 }
  0x82   : > { %871 = vmatpush2.bf16.msra.mxu0 %v1369_v34  ;;  %v1461_v34 = vld [vmem:[%s1824_s8 + $0x290] ss:$8 sps:$4 sm:$0xff]   ;;  %s238_s17 = scalar_lea.vmem [#allocation8], %s1134_s4  ;;  %s1244_s10 = sshll.u32 %s1735_s24, 8 }
  0x83   : > { %914 = vmatpush2.bf16.msra.mxu1 %v1370_v35  ;;  %872 = vmatprep.subr.bf16.mxu0 %v1371_v36  ;;  %v1466_v35 = vld [vmem:[%s1824_s8 + $0x284] ss:$8 sps:$4 sm:$0xff]   ;;  %v1464_v36 = vld [vmem:[%s1824_s8 + $0x280] ss:$8 sps:$4 sm:$0xff]   ;;  %s1017_s20 = sshll.u32 %s238_s17, 4  ;;  %s1934_s22 = scalar_lea.hbm %s1980_s3, %s1244_s10  ;;  %s1929_s20 = int_to_ptr.vmem [resolvable:$true] %s1017_s20 }
  0x84   : > { %915 = vmatprep.subr.bf16.mxu1 %v1373_v37  ;;  %v1467_v37 = vld [vmem:[#allocation2 + $0x10] ss:$24 sps:$4 sm:$0xff]   ;;  %s1004_s6 = scalar_lea.sflag [#allocation4], %s1821_s5  ;;  %s1552_s9 = scalar_lea.vmem %s1929_s20, 512 }
  0x85   : > { %p1553_p2 = scmp.ne.s32.totalorder %s1929_s20, %s1552_s9  ;;  %p1996_p4 = scmp.ne.s32.totalorder %s1987_s26, 0 }
  0x86   : > { %873 = vmatpush2.bf16.msra.mxu0 %v1375_v38  ;;  %s1630_s24 = smov [#allocation8]  }
  0x87   : > { %916 = vmatpush2.bf16.msra.mxu1 %v1376_v39  ;;  %874 = vmatprep.subr.bf16.mxu0 %v1377_v40  ;;  %v985_v39 = vlaneseq  ;;  %p1554_p5 = pnand %p1553_p2, %p1996_p4  ;;  %s1556_s21 = sshll.u32 %s1630_s24, 4  ;;  %s1557_s21 = int_to_ptr.vmem [resolvable:$false] %s1556_s21 }
  0x88   : > { %917 = vmatprep.subr.bf16.mxu1 %v1379_v41  ;;  %s1558_s23 = scalar_lea.vmem %s1557_s21, 1024  ;;  %p1559_p1 = scmp.lt.s32.totalorder %s1929_s20, %s1557_s21 }
  0x89   : > { %p1555_p9 = pneg %p1554_p5  ;;  %p1560_p11 = scmp.lt.s32.totalorder %s1558_s23, %s1552_s9 }
  0x8a   : > { %875 = vmatpush2.bf16.msra.mxu0 %v1381_v42  ;;  %v986_v42 = vshrl.u32 %v985_v39, 7 }
  0x8b   : > { %918 = vmatpush2.bf16.msra.mxu1 %v1382_v43  ;;  %876 = vmatprep.subr.bf16.mxu0 %v1383_v44  ;;  %p1561_p0 = por %p1560_p11, %p1559_p1 }
  0x8c   : > { %919 = vmatprep.subr.bf16.mxu1 %v1385_v45  ;;  %v987_v45 = vsub.s32 0, %v986_v42 }
  0x8d   : > { %p1562_p3 = pnand %p1561_p0, %p1555_p9 }
  0x8e   : > { %877 = vmatpush2.bf16.msra.mxu0 %v1387_v46  ;;  %v983_v46 = vld [vmem:[%s211_s28] sm:$0x3] }
  0x8f   : > { %920 = vmatpush2.bf16.msra.mxu1 %v1388_v47  ;;  %878 = vmatprep.subr.bf16.mxu0 %v1389_v48  ;;  %v991_v47 = vsub.s32 1, %v986_v42  ;;  %v988_v51 = vrot.slane %v983_v46, %v987_v45 }
  0x90   : > { %921 = vmatprep.subr.bf16.mxu1 %v1391_v50 }
  0x92   : > { %879 = vmatpush2.bf16.msra.mxu0 %v1393_v52 }
  0x93   : > { %922 = vmatpush2.bf16.msra.mxu1 %v1394_v53  ;;  %880 = vmatprep.subr.bf16.mxu0 %v1395_v54 }
  0x94   : > { %923 = vmatprep.subr.bf16.mxu1 %v1397_v55  ;;  %v992_v55 = vrot.slane %v983_v46, %v991_v47 }
  0x96   : > { %881 = vmatpush2.bf16.msra.mxu0 %v1399_v56 }
  0x97   : > { %924 = vmatpush2.bf16.msra.mxu1 %v1400_v57  ;;  %882 = vmatprep.subr.bf16.mxu0 %v1401_v58 }
  0x98   : > { %925 = vmatprep.subr.bf16.mxu1 %v1403_v59 }
  0x9a   : > { %883 = vmatpush2.bf16.msra.mxu0 %v1405_v60 }
  0x9b   : > { %926 = vmatpush2.bf16.msra.mxu1 %v1406_v61  ;;  %884 = vmatprep.subr.bf16.mxu0 %v1407_v62 }
  0x9c   : > { %927 = vmatprep.subr.bf16.mxu1 %v1409_v63 }
  0x9e   : > { %885 = vmatpush2.bf16.msra.mxu0 %v1411_v0 }
  0x9f   : > { %928 = vmatpush2.bf16.msra.mxu1 %v1412_v1  ;;  %940 = vmatprep.subr.bf16.mxu0 %v1421_v2 }
  0xa1   : > { %887 = vmatmul.mubr.bf16.vlgmr.msra.gmra.mxu0 %v1413_v3 }
  0xa2   : > { %930 = vmatmul.mubr.bf16.vlgmr.msra.gmra.mxu1 %v1416_v4  ;;  %941 = vmatpush1.bf16.msra.mxu0 %v1419_v5 }
  0xa3   : > { %942 = vmatprep.subr.bf16.mxu0 %v1424_v6  ;;  %972 = vmatprep.mubr.bf16.mxu0 %v1469_v7 }
  0xa6   : > { %943 = vmatpush1.bf16.msra.mxu0 %v1422_v8 }
  0xa7   : > { %944 = vmatprep.subr.bf16.mxu0 %v1427_v9 }
  0xaa   : > { %945 = vmatpush1.bf16.msra.mxu0 %v1425_v10 }
  0xab   : > { %946 = vmatprep.subr.bf16.mxu0 %v1430_v11 }
  0xae   : > { %947 = vmatpush1.bf16.msra.mxu0 %v1428_v12 }
  0xaf   : > { %948 = vmatprep.subr.bf16.mxu0 %v1433_v13 }
  0xb2   : > { %949 = vmatpush1.bf16.msra.mxu0 %v1431_v14 }
  0xb3   : > { %950 = vmatprep.subr.bf16.mxu0 %v1436_v15 }
  0xb6   : > { %951 = vmatpush1.bf16.msra.mxu0 %v1434_v16 }
  0xb7   : > { %952 = vmatprep.subr.bf16.mxu0 %v1439_v17 }
  0xba   : > { %953 = vmatpush1.bf16.msra.mxu0 %v1437_v18 }
  0xbb   : > { %954 = vmatprep.subr.bf16.mxu0 %v1442_v19 }
  0xbe   : > { %955 = vmatpush1.bf16.msra.mxu0 %v1440_v20 }
  0xbf   : > { %956 = vmatprep.subr.bf16.mxu0 %v1445_v21 }
  0xc2   : > { %957 = vmatpush2.bf16.msra.mxu0 %v1443_v22 }
  0xc3   : > { %958 = vmatprep.subr.bf16.mxu0 %v1448_v23 }
  0xc6   : > { %959 = vmatpush2.bf16.msra.mxu0 %v1446_v24 }
  0xc7   : > { %960 = vmatprep.subr.bf16.mxu0 %v1451_v25 }
  0xca   : > { %961 = vmatpush2.bf16.msra.mxu0 %v1449_v26 }
  0xcb   : > { %962 = vmatprep.subr.bf16.mxu0 %v1454_v27 }
  0xce   : > { %963 = vmatpush2.bf16.msra.mxu0 %v1452_v28 }
  0xcf   : > { %964 = vmatprep.subr.bf16.mxu0 %v1457_v29 }
  0xd2   : > { %965 = vmatpush2.bf16.msra.mxu0 %v1455_v30 }
  0xd3   : > { %966 = vmatprep.subr.bf16.mxu0 %v1460_v31 }
  0xd6   : > { %967 = vmatpush2.bf16.msra.mxu0 %v1458_v32 }
  0xd7   : > { %968 = vmatprep.subr.bf16.mxu0 %v1463_v33 }
  0xda   : > { %969 = vmatpush2.bf16.msra.mxu0 %v1461_v34 }
  0xdb   : > { %970 = vmatprep.subr.bf16.mxu0 %v1466_v35 }
  0xde   : > { %971 = vmatpush2.bf16.msra.mxu0 %v1464_v36 }
  0xe1   : > { %973 = vmatmul.mubr.bf16.vlgmr.msra.gmra.mxu0 %v1467_v37 }
 0x161   : > { %v888_v38 = vpop.f32.mrf.mxu0 }
 0x162   : > { %v931_v40 = vpop.f32.mrf.mxu1 }
 0x163   : > { %v890_v41 = vpop.f32.mrf.mxu0  ;;  %v932_v50 = vadd.f32 %v931_v40, %v888_v38 }
 0x164   : > { %v933_v43 = vpop.f32.mrf.mxu1 }
 0x165   : > { %v892_v44 = vpop.f32.mrf.mxu0  ;;  %v934_v53 = vadd.f32 %v933_v43, %v890_v41 }
 0x166   : > { %v935_v48 = vpop.f32.mrf.mxu1 }
 0x167   : > { %v894_v49 = vpop.f32.mrf.mxu0  ;;  %v936_v58 = vadd.f32 %v935_v48, %v892_v44 }
 0x168   : > { %v937_v56 = vpop.f32.mrf.mxu1 }
 0x169   : > { %v938_v62 = vadd.f32 %v937_v56, %v894_v49 }
 0x1a1   : > { %v974_v52 = vpop.f32.mrf.mxu0 }
 0x1a2   : > { %v975_v54 = vadd.f32 %v974_v52, %v932_v50 }
 0x1a3   : > { %v976_v57 = vpop.f32.mrf.mxu0 }
 0x1a4   : > { %v995_v59 = vmul.f32 %v988_v51, %v975_v54  ;;  %v977_v60 = vadd.f32 %v976_v57, %v934_v53 }
 0x1a5   : > { %v978_v61 = vpop.f32.mrf.mxu0 }
 0x1a6   : > { %999 = vst [vmem:[%s238_s17] sm:$0xff] %v995_v59  ;;  %v996_v63 = vmul.f32 %v992_v55, %v977_v60  ;;  %v979_v0 = vadd.f32 %v978_v61, %v936_v58 }
 0x1a7   : > { %v980_v1 = vpop.f32.mrf.mxu0 }
 0x1a8   : > { %1000 = vst [vmem:[%s238_s17 + $0x8] sm:$0xff] %v996_v63  ;;  %v997_v2 = vmul.f32 %v988_v51, %v979_v0  ;;  %v981_v3 = vadd.f32 %v980_v1, %v938_v62 }
 0x1aa   : > { %1001 = vst [vmem:[%s238_s17 + $0x10] sm:$0xff] %v997_v2  ;;  %v998_v4 = vmul.f32 %v992_v55, %v981_v3 }
 0x1ac   : > { %1002 = vst [vmem:[%s238_s17 + $0x18] sm:$0xff] %v998_v4 }
 0x1ad   : > { %1565 = shalt.err (!%p1562_p3)
}
 0x1ae   : > { %s1566_s25 = scalar_lea.hbm %s1934_s22, 512  ;;  %s1570_s8 = scalar_lea.hbm %s1980_s3, 1024 }
 0x1af   : > { %p1567_p12 = scmp.ne.s32.totalorder %s1934_s22, %s1566_s25  ;;  %p1571_p7 = scmp.lt.s32.totalorder %s1934_s22, %s1980_s3 }
 0x1b0   : > { %p1572_p10 = scmp.lt.s32.totalorder %s1570_s8, %s1566_s25 }
 0x1b1   : > { %p1568_p13 = pnand %p1567_p12, %p1996_p4 }
 0x1b2   : > { %p1573_p6 = por %p1572_p10, %p1571_p7 }
 0x1b3   : > { %p1569_p8 = pneg %p1568_p13 }
 0x1b5   : > { %p1574_p2 = pnand %p1573_p6, %p1569_p8 }
 0x1b7   : > { %1577 = shalt.err (!%p1574_p2)
}
 0x1b8   : > { %s1631_s4 = smov 256   ;;  %s1632_s17 = smov 512  }
 0x1b9   : > { %s1633_s10 = smov 16  }
 0x1ba   : > { %1255 = dma.vmem_to_hbm [thread:$0]  (%p1996_p4), %s1929_s20, 512, %s1934_s22, %s1004_s6, %s1631_s4, %s1632_s17, %s1633_s10  }
 0x1bb PF: > { %s1032_s11 = sand.u32 1, %s1608_s12   ;;  %p1997_p5 = scmp.ne.s32.totalorder %s1988_s29, 0 }
 0x1bc   : > { %p1998_p9 = scmp.ge.s32.totalorder %s1620_s15, 2  ;;  %s1033_s18 = scalar_lea.sflag [#allocation4], %s1032_s11 }
 0x1be   : > { %p1269_p1 = pnand %p1998_p9, %p1997_p5 }
 0x1c0   : > { %p1270_p11 = pneg %p1269_p1 }
 0x1c2   : > { %1603 = dma.done.wait (%p1270_p11), %s1033_s18, 512  }
 0x1c3   : > { %1605 = vsyncadd (%p1270_p11), %s1033_s18, 4294966784  ;;  %p17_p0 = scmp.ge.s32.totalorder %s1675_s16, 4   ;;  %s1999_s12 = smov %s1612_s13 }
 0x1c4   : > { %s2000_s13 = smov %s1616_s14  ;;  %s2001_s14 = smov %s1686_s19 }
 0x1c5   : > { %s2002_s15 = smov %s1675_s16  ;;  %19 = sbr.rel (!%p17_p0) target bundleno = 6 (0x6), region = 93 }
 0x1ca   :  { %1038 = vsyncpa [#allocation3], 1 }
 0x1cb   :  { %1040 = vsyncpa [#allocation3 + $0x1], 1 }
 0x1cc   :  { %1041 = vsyncpa [#allocation6], 1 }
 0x1cd   :  { %1043 = vsyncpa [#allocation6 + $0x1], 1 }
 0x1ce   :  { %1044 = vsyncpa [#allocation4], 1 }
 0x1cf   :  { %1046 = vsyncpa [#allocation4 + $0x1], 1 }

</bundles_post_ra>
